<compile_context>
chip_gen: v7x
topology: tpu7x:2x2x1
jax: 0.10.0
libtpu: 0.0.40
codegen_flags: <defaults>
</compile_context>

<pallas_src>
import jax
import jax.numpy as jnp
from jax.experimental import pallas as pl
from jax.experimental.pallas import tpu as pltpu

LANE = 128
MAX_BATCH_TILE = 8192


def _round_up(x, m):
    return ((x + m - 1) // m) * m


def _vmem_capacity_bytes():
    try:
        return int(pltpu.get_tpu_info().vmem_capacity_bytes)
    except Exception:
        return 64 << 20  # conservative fallback: v7x per-TensorCore VMEM


def _choose_batch_tile(batch, d_u, h_max):
    """Pick the batch (lane-axis) tile from actual dims and VMEM capacity."""
    padded0 = _round_up(max(batch, 1), LANE)
    budget = int(_vmem_capacity_bytes() * 0.4)        # leave room for weights/temps
    per_col = (2 * 2 * d_u * 2                        # user+item bf16 blocks, double-buffered
               + 2 * 4                                # [1, Bt] f32 output, double-buffered
               + (h_max + 2 * d_u) * 4)               # f32 in-kernel intermediates
    bt = max(LANE, min(MAX_BATCH_TILE, (budget // per_col) // LANE * LANE))
    bt = min(bt, padded0)                             # never tile wider than the batch
    # v7x megacore: guarantee >=2 grid steps when the batch allows it, so the
    # "parallel" axis shards across both TensorCores (no effect on v5e/v6e).
    if padded0 >= 2 * LANE:
        bt = min(bt, max(LANE, (padded0 // 2) // LANE * LANE))
    padded = _round_up(max(batch, 1), bt)
    return bt, padded


def _vmem_limit_bytes(bt, d_u, h_max, weight_bytes):
    est = ((2 * 2 * d_u * 2 + 2 * 4 + (h_max + 2 * d_u) * 4) * bt
           + 2 * weight_bytes + (4 << 20))
    cap = int(_vmem_capacity_bytes() * 0.9)
    return int(max(min(cap, max(est, 32 << 20)), 1 << 20))


def make_neumf_kernel(num_fc_layers):
    """Kernel body.  Ref layout (batch on the 128-lane axis):
      user, item : [d_u, Bt] bf16, d_u = d_mlp + d_mf (mlp rows first, then mf)
      fc0        : w0u [h1, d_u], w0i [h1, d_u] (zero over mf rows), b0 [h1, 1]
      fc k>0     : w [hk+1, hk], b [hk+1, 1]
      head       : wa_mlp [h_last, 1], wa_mf [d_u, 1] (zero over mlp rows), ba [1, 1]
      out        : [1, Bt] f32
    """

    def kernel(*refs):
        f32 = jnp.float32
        out_ref = refs[-1]
        user_ref, item_ref = refs[0], refs[1]
        pos = 2

        # bf16 storage on the HBM-dominant activation streams; upcast to f32
        # right after load (v5e has no bf16 VPU/EUP; upcast is free VPU work).
        u = user_ref[...].astype(f32)
        it = item_ref[...].astype(f32)

        # --- MLP tower ------------------------------------------------------
        # layer 0: cat([u_mlp, i_mlp]) folded into a split matmul over the two
        # streams; w0u/w0i are zero-extended over the mf rows so the full
        # [d_u, Bt] blocks feed the MXU with no sub-slicing.
        w0u_ref, w0i_ref, b0_ref = refs[pos:pos + 3]
        pos += 3
        h = (jnp.dot(w0u_ref[...], u, preferred_element_type=f32)
             + jnp.dot(w0i_ref[...], it, preferred_element_type=f32)
             + b0_ref[...])
        h = jnp.maximum(h, 0.0)

        for _ in range(num_fc_layers - 1):
            w_ref, b_ref = refs[pos:pos + 2]
            pos += 2
            h = jnp.dot(w_ref[...], h, preferred_element_type=f32) + b_ref[...]
            h = jnp.maximum(h, 0.0)

        wa_mlp_ref, wa_mf_ref, ba_ref = refs[pos:pos + 3]

        # --- MF tower + width-1 affine head -----------------------------------
        # Output width is 1 -> VPU broadcast-mul + sublane (feature) reduction.
        # wa_mf is zero-extended over the mlp rows, so the full-block product
        # u*it needs no slicing: the mlp rows contribute zero to the head.
        mf_full = u * it
        logits = (jnp.sum(h * wa_mlp_ref[...], axis=0, keepdims=True)
                  + jnp.sum(mf_full * wa_mf_ref[...], axis=0, keepdims=True)
                  + ba_ref[...])

        # Exact sigmoid: HBM-bound kernel -> EUP/VPU slack makes this free.
        out_ref[...] = (1.0 / (1.0 + jnp.exp(-logits))).astype(out_ref.dtype)

    return kernel


def pack_params(params):
    """One-time repack of PyTorch-layout params into kernel layout.

    * Merge user mlp|mf and item mlp|mf embedding tables along features (2
      gathers instead of 4 in the forward) and store them in bf16.
    * Split / zero-extend fc0 and the affine head so torch.cat disappears.
    """
    d_mlp = params["emb_user_mlp"].shape[1]
    d_mf = params["emb_user_mf"].shape[1]
    d_u = d_mlp + d_mf
    num_fc = len([k for k in params if k.startswith("fc") and k.endswith("_w")])

    packed = {
        "user_table": jnp.concatenate(
            [params["emb_user_mlp"], params["emb_user_mf"]], axis=1).astype(jnp.bfloat16),
        "item_table": jnp.concatenate(
            [params["emb_item_mlp"], params["emb_item_mf"]], axis=1).astype(jnp.bfloat16),
    }

    w0 = params["fc0_w"]                                   # [h1, 2*d_mlp]
    h1 = w0.shape[0]
    packed["fc0_wu"] = jnp.zeros((h1, d_u), jnp.float32).at[:, :d_mlp].set(w0[:, :d_mlp])
    packed["fc0_wi"] = jnp.zeros((h1, d_u), jnp.float32).at[:, :d_mlp].set(w0[:, d_mlp:])
    packed["fc0_b"] = params["fc0_b"].astype(jnp.float32)[:, None]

    for idx in range(1, num_fc):
        packed[f"fc{idx}_w"] = params[f"fc{idx}_w"].astype(jnp.float32)
        packed[f"fc{idx}_b"] = params[f"fc{idx}_b"].astype(jnp.float32)[:, None]

    h_last = params[f"fc{num_fc - 1}_w"].shape[0]
    wa = params["aff_w"]                                   # [1, h_last + d_mf]
    packed["head_w_mlp"] = wa[:, :h_last].astype(jnp.float32).T            # [h_last, 1]
    packed["head_w_mf"] = jnp.zeros((d_u, 1), jnp.float32).at[d_mlp:, :].set(
        wa[:, h_last:].astype(jnp.float32).T)                              # [d_u, 1]
    packed["head_b"] = params["aff_b"].astype(jnp.float32).reshape(1, 1)
    return packed


def neumf_forward(user_indices, item_indices, packed):
    """Embedding gathers (XLA glue) + one batch-tiled pallas_call for the math."""
    batch = user_indices.shape[0]
    d_u = packed["user_table"].shape[1]
    num_fc = len([k for k in packed if k.startswith("fc") and k.endswith("_b")])

    hidden_sizes = [packed["fc0_wu"].shape[0]] + [
        packed[f"fc{idx}_w"].shape[0] for idx in range(1, num_fc)]
    h_max = max(hidden_sizes)

    weights = [packed["fc0_wu"], packed["fc0_wi"], packed["fc0_b"]]
    for idx in range(1, num_fc):
        weights += [packed[f"fc{idx}_w"], packed[f"fc{idx}_b"]]
    weights += [packed["head_w_mlp"], packed["head_w_mf"], packed["head_b"]]
    weight_bytes = sum(int(w.size) * 4 for w in weights)

    bt, padded = _choose_batch_tile(batch, d_u, h_max)
    if padded != batch:
        pad = padded - batch
        user_indices = jnp.pad(user_indices, (0, pad))
        item_indices = jnp.pad(item_indices, (0, pad))

    # Two bf16 gathers (merged mlp|mf tables); transpose to [d_u, B] is fused
    # into the gather by XLA.  Padded rows gather index 0 and are discarded.
    u_act = jnp.take(packed["user_table"], user_indices, axis=0).T
    i_act = jnp.take(packed["item_table"], item_indices, axis=0).T

    def act_spec():
        return pl.BlockSpec((d_u, bt), lambda b: (0, b))

    def pinned_spec(shape):
        # Constant index_map: DMA'd once, resident across all grid steps.
        return pl.BlockSpec(shape, lambda b: (0, 0))

    inputs = [u_act, i_act] + weights
    in_specs = [act_spec(), act_spec()] + [pinned_spec(w.shape) for w in weights]

    out = pl.pallas_call(
        make_neumf_kernel(num_fc),
        out_shape=jax.ShapeDtypeStruct((1, padded), jnp.float32),
        grid=(padded // bt,),
        in_specs=in_specs,
        out_specs=pl.BlockSpec((1, bt), lambda b: (0, b)),
        compiler_params=pltpu.CompilerParams(
            dimension_semantics=("parallel",),
            vmem_limit_bytes=_vmem_limit_bytes(bt, d_u, h_max, weight_bytes)),
    )(*inputs)

    # back to PyTorch's [batch, 1] shape, dropping the batch padding
    return out[0, :batch][:, None]


def neumf_reference(user_indices, item_indices, params):
    """Pure-JAX f32 reference matching the PyTorch module."""
    u_mlp = jnp.take(params["emb_user_mlp"], user_indices, axis=0)
    i_mlp = jnp.take(params["emb_item_mlp"], item_indices, axis=0)
    u_mf = jnp.take(params["emb_user_mf"], user_indices, axis=0)
    i_mf = jnp.take(params["emb_item_mf"], item_indices, axis=0)
    h = jnp.concatenate([u_mlp, i_mlp], axis=-1)
    num_fc = len([k for k in params if k.startswith("fc") and k.endswith("_w")])
    for idx in range(num_fc):
        h = h @ params[f"fc{idx}_w"].T + params[f"fc{idx}_b"]
        h = jnp.maximum(h, 0.0)
    mf = u_mf * i_mf
    v = jnp.concatenate([h, mf], axis=-1)
    logits = v @ params["aff_w"].T + params["aff_b"]
    return jax.nn.sigmoid(logits)


def init_params(key, num_users, num_items, latent_dim_mlp, latent_dim_mf, layers):
    """Deterministic synthetic parameter init matching the module's shapes."""
    ks = jax.random.split(key, 16)
    p = {
        # nn.Embedding default init: N(0, 1)
        "emb_user_mlp": jax.random.normal(ks[0], (num_users, latent_dim_mlp), jnp.float32),
        "emb_item_mlp": jax.random.normal(ks[1], (num_items, latent_dim_mlp), jnp.float32),
        "emb_user_mf": jax.random.normal(ks[2], (num_users, latent_dim_mf), jnp.float32),
        "emb_item_mf": jax.random.normal(ks[3], (num_items, latent_dim_mf), jnp.float32),
    }
    # nn.Linear default init: U(-1/sqrt(in), 1/sqrt(in)), weight shape [out, in]
    ki = 4
    for idx, (in_size, out_size) in enumerate(zip(layers[:-1], layers[1:])):
        bound = 1.0 / jnp.sqrt(in_size)
        p[f"fc{idx}_w"] = jax.random.uniform(
            ks[ki], (out_size, in_size), jnp.float32, -bound, bound); ki += 1
        p[f"fc{idx}_b"] = jax.random.uniform(
            ks[ki], (out_size,), jnp.float32, -bound, bound); ki += 1
    aff_in = layers[-1] + latent_dim_mf
    bound = 1.0 / jnp.sqrt(aff_in)
    p["aff_w"] = jax.random.uniform(ks[ki], (1, aff_in), jnp.float32, -bound, bound); ki += 1
    p["aff_b"] = jax.random.uniform(ks[ki], (1,), jnp.float32, -bound, bound)
    return p


if __name__ == "__main__":
    # Small config consistent with the module:
    #   layers[0] must equal 2 * latent_dim_mlp for the concat to type-check.
    config = dict(
        num_users=32,
        num_items=48,
        latent_dim_mlp=8,
        latent_dim_mf=8,
        layers=[16, 32, 16, 8],
    )

    key = jax.random.PRNGKey(0)
    kp, ku, ki = jax.random.split(key, 3)
    params = init_params(kp, config["num_users"], config["num_items"],
                         config["latent_dim_mlp"], config["latent_dim_mf"],
                         config["layers"])
    packed = pack_params(params)

    batch = 8
    user_indices = jax.random.randint(ku, (batch,), 0, config["num_users"], jnp.int32)
    item_indices = jax.random.randint(ki, (batch,), 0, config["num_items"], jnp.int32)

    fwd = jax.jit(neumf_forward)
    rating = fwd(user_indices, item_indices, packed)
    jax.block_until_ready(rating)

    assert rating.shape == (batch, 1)
    assert bool(jnp.all(jnp.isfinite(rating)))
    assert bool(jnp.all((rating >= 0.0) & (rating <= 1.0)))

    # Exact sigmoid + f32 in-kernel math; the only deviation from the f32
    # reference is the bf16 storage of the embedding tables (~0.4% input
    # rounding), so a 1e-2 tolerance is comfortably safe.
    ref = neumf_reference(user_indices, item_indices, params)
    assert bool(jnp.allclose(rating, ref, atol=1e-2, rtol=1e-2))

    print("KERNEL_OK")
</pallas_src>

<mosaic_0001>
module attributes {stable_mosaic.version = 11 : i64} {
  func.func @kernel(%arg0: i32, %arg1: memref<16x128xbf16, #tpu.memory_space<vmem>>, %arg2: memref<16x128xbf16, #tpu.memory_space<vmem>>, %arg3: memref<32x16xf32, #tpu.memory_space<vmem>>, %arg4: memref<32x16xf32, #tpu.memory_space<vmem>>, %arg5: memref<32x1xf32, #tpu.memory_space<vmem>>, %arg6: memref<16x32xf32, #tpu.memory_space<vmem>>, %arg7: memref<16x1xf32, #tpu.memory_space<vmem>>, %arg8: memref<8x16xf32, #tpu.memory_space<vmem>>, %arg9: memref<8x1xf32, #tpu.memory_space<vmem>>, %arg10: memref<8x1xf32, #tpu.memory_space<vmem>>, %arg11: memref<16x1xf32, #tpu.memory_space<vmem>>, %arg12: memref<1x1xf32, #tpu.memory_space<vmem>>, %arg13: memref<1x128xf32, #tpu.memory_space<vmem>>) attributes {dimension_semantics = [#tpu.dimension_semantics<parallel>], iteration_bounds = array<i64: 1>, scalar_prefetch = 0 : i64, scratch_operands = 0 : i64, tpu.core_type = #tpu.core_type<tc>, window_params = [{transform_indices = @transform_0, window_bounds = array<i64: 16, 128>}, {transform_indices = @transform_1, window_bounds = array<i64: 16, 128>}, {pipeline_mode = #tpu.pipeline_mode<synchronous>, transform_indices = @transform_2, window_bounds = array<i64: 32, 16>}, {pipeline_mode = #tpu.pipeline_mode<synchronous>, transform_indices = @transform_3, window_bounds = array<i64: 32, 16>}, {pipeline_mode = #tpu.pipeline_mode<synchronous>, transform_indices = @transform_4, window_bounds = array<i64: 32, 1>}, {pipeline_mode = #tpu.pipeline_mode<synchronous>, transform_indices = @transform_5, window_bounds = array<i64: 16, 32>}, {pipeline_mode = #tpu.pipeline_mode<synchronous>, transform_indices = @transform_6, window_bounds = array<i64: 16, 1>}, {pipeline_mode = #tpu.pipeline_mode<synchronous>, transform_indices = @transform_7, window_bounds = array<i64: 8, 16>}, {pipeline_mode = #tpu.pipeline_mode<synchronous>, transform_indices = @transform_8, window_bounds = array<i64: 8, 1>}, {pipeline_mode = #tpu.pipeline_mode<synchronous>, transform_indices = @transform_9, window_bounds = array<i64: 8, 1>}, {pipeline_mode = #tpu.pipeline_mode<synchronous>, transform_indices = @transform_10, window_bounds = array<i64: 16, 1>}, {pipeline_mode = #tpu.pipeline_mode<synchronous>, transform_indices = @transform_11, window_bounds = array<i64: 1, 1>}, {transform_indices = @transform_12, window_bounds = array<i64: 1, 128>}]} {
    %c0 = arith.constant 0 : index
    %c0_0 = arith.constant 0 : index
    %0 = vector.load %arg1[%c0, %c0_0] : memref<16x128xbf16, #tpu.memory_space<vmem>>, vector<16x128xbf16>
    %1 = arith.extf %0 : vector<16x128xbf16> to vector<16x128xf32>
    %c0_1 = arith.constant 0 : index
    %c0_2 = arith.constant 0 : index
    %2 = vector.load %arg2[%c0_1, %c0_2] : memref<16x128xbf16, #tpu.memory_space<vmem>>, vector<16x128xbf16>
    %3 = arith.extf %2 : vector<16x128xbf16> to vector<16x128xf32>
    %c0_3 = arith.constant 0 : index
    %c0_4 = arith.constant 0 : index
    %4 = vector.load %arg3[%c0_3, %c0_4] : memref<32x16xf32, #tpu.memory_space<vmem>>, vector<32x16xf32>
    %cst = arith.constant dense<0.000000e+00> : vector<32x128xf32>
    %5 = tpu.matmul %4, %1, %cst {dimension_numbers = #tpu.dot_dimension_numbers<[1], [0], [0], [1], [0, 0, 1, 1], [], []>} : vector<32x16xf32>, vector<16x128xf32>, vector<32x128xf32> -> vector<32x128xf32>
    %c0_5 = arith.constant 0 : index
    %c0_6 = arith.constant 0 : index
    %6 = vector.load %arg4[%c0_5, %c0_6] : memref<32x16xf32, #tpu.memory_space<vmem>>, vector<32x16xf32>
    %cst_7 = arith.constant dense<0.000000e+00> : vector<32x128xf32>
    %7 = tpu.matmul %6, %3, %cst_7 {dimension_numbers = #tpu.dot_dimension_numbers<[1], [0], [0], [1], [0, 0, 1, 1], [], []>} : vector<32x16xf32>, vector<16x128xf32>, vector<32x128xf32> -> vector<32x128xf32>
    %8 = arith.addf %5, %7 : vector<32x128xf32>
    %c0_8 = arith.constant 0 : index
    %c0_9 = arith.constant 0 : index
    %9 = vector.load %arg5[%c0_8, %c0_9] : memref<32x1xf32, #tpu.memory_space<vmem>>, vector<32x1xf32>
    %10 = vector.broadcast %9 : vector<32x1xf32> to vector<32x128xf32>
    %11 = arith.addf %8, %10 : vector<32x128xf32>
    %cst_10 = arith.constant 0.000000e+00 : f32
    %12 = vector.broadcast %cst_10 : f32 to vector<32x128xf32>
    %13 = arith.maximumf %11, %12 : vector<32x128xf32>
    %c0_11 = arith.constant 0 : index
    %c0_12 = arith.constant 0 : index
    %14 = vector.load %arg6[%c0_11, %c0_12] : memref<16x32xf32, #tpu.memory_space<vmem>>, vector<16x32xf32>
    %cst_13 = arith.constant dense<0.000000e+00> : vector<16x128xf32>
    %15 = tpu.matmul %14, %13, %cst_13 {dimension_numbers = #tpu.dot_dimension_numbers<[1], [0], [0], [1], [0, 0, 1, 1], [], []>} : vector<16x32xf32>, vector<32x128xf32>, vector<16x128xf32> -> vector<16x128xf32>
    %c0_14 = arith.constant 0 : index
    %c0_15 = arith.constant 0 : index
    %16 = vector.load %arg7[%c0_14, %c0_15] : memref<16x1xf32, #tpu.memory_space<vmem>>, vector<16x1xf32>
    %17 = vector.broadcast %16 : vector<16x1xf32> to vector<16x128xf32>
    %18 = arith.addf %15, %17 : vector<16x128xf32>
    %cst_16 = arith.constant 0.000000e+00 : f32
    %19 = vector.broadcast %cst_16 : f32 to vector<16x128xf32>
    %20 = arith.maximumf %18, %19 : vector<16x128xf32>
    %c0_17 = arith.constant 0 : index
    %c0_18 = arith.constant 0 : index
    %21 = vector.load %arg8[%c0_17, %c0_18] : memref<8x16xf32, #tpu.memory_space<vmem>>, vector<8x16xf32>
    %cst_19 = arith.constant dense<0.000000e+00> : vector<8x128xf32>
    %22 = tpu.matmul %21, %20, %cst_19 {dimension_numbers = #tpu.dot_dimension_numbers<[1], [0], [0], [1], [0, 0, 1, 1], [], []>} : vector<8x16xf32>, vector<16x128xf32>, vector<8x128xf32> -> vector<8x128xf32>
    %c0_20 = arith.constant 0 : index
    %c0_21 = arith.constant 0 : index
    %23 = vector.load %arg9[%c0_20, %c0_21] : memref<8x1xf32, #tpu.memory_space<vmem>>, vector<8x1xf32>
    %24 = vector.broadcast %23 : vector<8x1xf32> to vector<8x128xf32>
    %25 = arith.addf %22, %24 : vector<8x128xf32>
    %cst_22 = arith.constant 0.000000e+00 : f32
    %26 = vector.broadcast %cst_22 : f32 to vector<8x128xf32>
    %27 = arith.maximumf %25, %26 : vector<8x128xf32>
    %28 = arith.mulf %1, %3 : vector<16x128xf32>
    %c0_23 = arith.constant 0 : index
    %c0_24 = arith.constant 0 : index
    %29 = vector.load %arg10[%c0_23, %c0_24] : memref<8x1xf32, #tpu.memory_space<vmem>>, vector<8x1xf32>
    %30 = vector.broadcast %29 : vector<8x1xf32> to vector<8x128xf32>
    %31 = arith.mulf %27, %30 : vector<8x128xf32>
    %cst_25 = arith.constant dense<0.000000e+00> : vector<128xf32>
    %32 = vector.multi_reduction <add>, %31, %cst_25 [0] : vector<8x128xf32> to vector<128xf32>
    %33 = vector.shape_cast %32 : vector<128xf32> to vector<1x128xf32>
    %c0_26 = arith.constant 0 : index
    %c0_27 = arith.constant 0 : index
    %34 = vector.load %arg11[%c0_26, %c0_27] : memref<16x1xf32, #tpu.memory_space<vmem>>, vector<16x1xf32>
    %35 = vector.broadcast %34 : vector<16x1xf32> to vector<16x128xf32>
    %36 = arith.mulf %28, %35 : vector<16x128xf32>
    %cst_28 = arith.constant dense<0.000000e+00> : vector<128xf32>
    %37 = vector.multi_reduction <add>, %36, %cst_28 [0] : vector<16x128xf32> to vector<128xf32>
    %38 = vector.shape_cast %37 : vector<128xf32> to vector<1x128xf32>
    %39 = arith.addf %33, %38 : vector<1x128xf32>
    %c0_29 = arith.constant 0 : index
    %c0_30 = arith.constant 0 : index
    %40 = vector.load %arg12[%c0_29, %c0_30] : memref<1x1xf32, #tpu.memory_space<vmem>>, vector<1x1xf32>
    %41 = vector.broadcast %40 : vector<1x1xf32> to vector<1x128xf32>
    %42 = arith.addf %39, %41 : vector<1x128xf32>
    %cst_31 = arith.constant 0.000000e+00 : f32
    %43 = vector.broadcast %cst_31 : f32 to vector<1x128xf32>
    %44 = arith.subf %43, %42 : vector<1x128xf32>
    %45 = math.exp %44 : vector<1x128xf32>
    %cst_32 = arith.constant 1.000000e+00 : f32
    %46 = vector.broadcast %cst_32 : f32 to vector<1x128xf32>
    %47 = arith.addf %46, %45 : vector<1x128xf32>
    %cst_33 = arith.constant 1.000000e+00 : f32
    %48 = vector.broadcast %cst_33 : f32 to vector<1x128xf32>
    %49 = arith.divf %48, %47 : vector<1x128xf32>
    %c0_34 = arith.constant 0 : index
    %c0_35 = arith.constant 0 : index
    %50 = vector.load %arg13[%c0_34, %c0_35] : memref<1x128xf32, #tpu.memory_space<vmem>>, vector<1x128xf32>
    tpu.vector_store %arg13[%c0_34, %c0_35], %49 {strides = array<i32>} : memref<1x128xf32, #tpu.memory_space<vmem>>, vector<1x128xf32>,
    return
  }
  func.func @transform_0(%arg0: i32) -> (i32, i32) {
    %c0_i32 = arith.constant 0 : i32
    %c0_i32_0 = arith.constant 0 : i32
    return %c0_i32, %arg0 : i32, i32
  }
  func.func @transform_1(%arg0: i32) -> (i32, i32) {
    %c0_i32 = arith.constant 0 : i32
    %c0_i32_0 = arith.constant 0 : i32
    return %c0_i32, %arg0 : i32, i32
  }
  func.func @transform_2(%arg0: i32) -> (i32, i32) {
    %c0_i32 = arith.constant 0 : i32
    %c0_i32_0 = arith.constant 0 : i32
    %c0_i32_1 = arith.constant 0 : i32
    return %c0_i32, %c0_i32_0 : i32, i32
  }
  func.func @transform_3(%arg0: i32) -> (i32, i32) {
    %c0_i32 = arith.constant 0 : i32
    %c0_i32_0 = arith.constant 0 : i32
    %c0_i32_1 = arith.constant 0 : i32
    return %c0_i32, %c0_i32_0 : i32, i32
  }
  func.func @transform_4(%arg0: i32) -> (i32, i32) {
    %c0_i32 = arith.constant 0 : i32
    %c0_i32_0 = arith.constant 0 : i32
    %c0_i32_1 = arith.constant 0 : i32
    return %c0_i32, %c0_i32_0 : i32, i32
  }
  func.func @transform_5(%arg0: i32) -> (i32, i32) {
    %c0_i32 = arith.constant 0 : i32
    %c0_i32_0 = arith.constant 0 : i32
    %c0_i32_1 = arith.constant 0 : i32
    return %c0_i32, %c0_i32_0 : i32, i32
  }
  func.func @transform_6(%arg0: i32) -> (i32, i32) {
    %c0_i32 = arith.constant 0 : i32
    %c0_i32_0 = arith.constant 0 : i32
    %c0_i32_1 = arith.constant 0 : i32
    return %c0_i32, %c0_i32_0 : i32, i32
  }
  func.func @transform_7(%arg0: i32) -> (i32, i32) {
    %c0_i32 = arith.constant 0 : i32
    %c0_i32_0 = arith.constant 0 : i32
    %c0_i32_1 = arith.constant 0 : i32
    return %c0_i32, %c0_i32_0 : i32, i32
  }
  func.func @transform_8(%arg0: i32) -> (i32, i32) {
    %c0_i32 = arith.constant 0 : i32
    %c0_i32_0 = arith.constant 0 : i32
    %c0_i32_1 = arith.constant 0 : i32
    return %c0_i32, %c0_i32_0 : i32, i32
  }
  func.func @transform_9(%arg0: i32) -> (i32, i32) {
    %c0_i32 = arith.constant 0 : i32
    %c0_i32_0 = arith.constant 0 : i32
    %c0_i32_1 = arith.constant 0 : i32
    return %c0_i32, %c0_i32_0 : i32, i32
  }
  func.func @transform_10(%arg0: i32) -> (i32, i32) {
    %c0_i32 = arith.constant 0 : i32
    %c0_i32_0 = arith.constant 0 : i32
    %c0_i32_1 = arith.constant 0 : i32
    return %c0_i32, %c0_i32_0 : i32, i32
  }
  func.func @transform_11(%arg0: i32) -> (i32, i32) {
    %c0_i32 = arith.constant 0 : i32
    %c0_i32_0 = arith.constant 0 : i32
    %c0_i32_1 = arith.constant 0 : i32
    return %c0_i32, %c0_i32_0 : i32, i32
  }
  func.func @transform_12(%arg0: i32) -> (i32, i32) {
    %c0_i32 = arith.constant 0 : i32
    %c0_i32_0 = arith.constant 0 : i32
    return %c0_i32, %arg0 : i32, i32
  }
}

</mosaic_0001>

<bundles_post_ra>
// kernel: neumf_forward.1
= control target key start
LH: loop header
LB: loop body
LE: loop exit
PB: predicated region body
PF: predicated region fallthrough
CT: control target
= control target key end

     0   :  { %vm59_vm0 = vcmask 130048   ;;  %v635_v2 = vmov 0   ;;  %vm300_vm1 = vcmask 261120   ;;  %v636_v57 = vmov 0.0|0.0   ;;  %s790_s1 = inlined_call_operand.vmem [shape: bf16[16,128], index: 1, kind: input, shape index: {}]   ;;  %s791_s3 = inlined_call_operand.vmem [shape: f32[32,16], index: 3, kind: input, shape index: {}]   ;;  %s792_s0 = inlined_call_operand.vmem [shape: bf16[16,128], index: 0, kind: input, shape index: {}]   ;;  %s793_s11 = inlined_call_operand.<no memory space> [shape: f32[1,1], index: 11, kind: input, shape index: {}]   ;;  %s794_s4 = inlined_call_operand.vmem [shape: f32[32,1], index: 4, kind: input, shape index: {}]   ;;  %s795_s2 = inlined_call_operand.vmem [shape: f32[32,16], index: 2, kind: input, shape index: {}]   ;;  %s796_s6 = inlined_call_operand.vmem [shape: f32[16,1], index: 6, kind: input, shape index: {}]   ;;  %s797_s8 = inlined_call_operand.vmem [shape: f32[8,1], index: 8, kind: input, shape index: {}]   ;;  %s798_s10 = inlined_call_operand.vmem [shape: f32[16,1], index: 10, kind: input, shape index: {}]   ;;  %s799_s9 = inlined_call_operand.vmem [shape: f32[8,1], index: 9, kind: input, shape index: {}]   ;;  %s800_s5 = inlined_call_operand.vmem [shape: f32[16,32], index: 5, kind: input, shape index: {}]   ;;  %s801_s7 = inlined_call_operand.vmem [shape: f32[8,16], index: 7, kind: input, shape index: {}]   ;;  %s802_s12 = inlined_call_operand.vmem [shape: f32[1,128], index: 12, kind: output, shape index: {}]  }
   0x1   :  { %v540_v0 = vld [vmem:[%s790_s1] sm:$0xff]   ;;  %629 = vset.pattern.permute.xlu0 %v635_v2  ;;  %630 = vset.pattern.permute.xlu1 %v635_v2  ;;  %v17_v3 = vstv %s793_s11  ;;  %v56_v5 = vld [vmem:[%s791_s3 + $0x8] sm:$0xff]  ;;  %v57_v6 = vld [vmem:[%s791_s3 + $0x10] sm:$0xff]  ;;  %vm637_vm2 = vmmov 0   ;;  %v638_v58 = vmov 0.0  }
   0x2   :  { %v55_v1 = vld [vmem:[%s791_s3] sm:$0xff]  ;;  %603 = vmatprep.subr.bf16.mxu0 %v540_v0  ;;  %18 = vst [vmem:[#allocation2] sm:$0x1] %v17_v3  ;;  %v256_v8 = vld [vmem:[%s794_s4 + $0x10] sm:$0xff]  ;;  %v255_v9 = vld [vmem:[%s794_s4 + $0x8] sm:$0xff]  ;;  %v541_v21 = vunpack.c.l.bf16 %v540_v0  ;;  %v542_v26 = vunpack.c.h.bf16 %v540_v0 }
   0x3   :  { %568 = vmatprep.mubr.msk.f32.mxu0 %vm59_vm0, %v55_v1  ;;  %v536_v4 = vld [vmem:[%s792_s0] sm:$0xff]   ;;  %605 = vmatpush3.bf16.msra.mxu0 %v540_v0  ;;  %v257_v10 = vld [vmem:[%s794_s4 + $0x18] sm:$0xff]  ;;  %v289_v14 = vld [vmem:[%s796_s6 + $0x8] sm:$0xff] }
   0x4   :  { %607 = vmatprep.subr.bf16.mxu0 %v536_v4  ;;  %v254_v7 = vld [vmem:[%s794_s4] sm:$0xff]  ;;  %270 = vperm.xlu1 %630, %v256_v8   ;;  %v58_v11 = vld [vmem:[%s791_s3 + $0x18] sm:$0xff]  ;;  %v52_v15 = vld [vmem:[%s795_s2 + $0x8] sm:$0xff]  ;;  %v537_v20 = vunpack.c.l.bf16 %v536_v4  ;;  %v538_v25 = vunpack.c.h.bf16 %v536_v4 }
   0x5   :  { %260 = vperm.xlu0 %629, %v254_v7   ;;  %v51_v12 = vld [vmem:[%s795_s2] sm:$0xff]  ;;  %v53_v16 = vld [vmem:[%s795_s2 + $0x10] sm:$0xff]  ;;  %v54_v19 = vld [vmem:[%s795_s2 + $0x18] sm:$0xff] }
   0x6   :  { %569 = vmatmul.mubr.msk.f32.vlgmr.msra.gmra.mrb[0].mxu0 %vm59_vm0, %v56_v5  ;;  %v288_v13 = vld [vmem:[%s796_s6] sm:$0xff]  ;;  %v481_v22 = vld [vmem:[%s798_s10 + $0x8] sm:$0xff]  ;;  %v465_v24 = vmul.f32 %v541_v21, %v537_v20  ;;  %v466_v28 = vmul.f32 %v542_v26, %v538_v25 }
   0x7   :  { %609 = vmatpush3.bf16.msra.mxu0 %v536_v4  ;;  %571 = vmatprep.mubr.msk.f32.mxu0 %vm59_vm0, %v57_v6  ;;  %v385_v17 = vld [vmem:[%s797_s8] sm:$0xff]  ;;  %v287_v56 = vld [vmem:[%s800_s5 + $0x8] sm:$0xff] }
   0x8   :  { %275 = vperm.xlu1 %630, %v257_v10   ;;  %v480_v18 = vld [vmem:[%s798_s10] sm:$0xff] }
   0x9   :  { %265 = vperm.xlu0 %629, %v255_v9   ;;  %v467_v23 = vld [vmem:[%s799_s9] sm:$0xff] }
   0xa   :  { %572 = vmatmul.mubr.msk.f32.gmra.mrb[2].mxu0 %vm59_vm0, %v58_v11  ;;  %v502_v27 = vld [vmem:[#allocation2] sm:$0x1] }
   0xb   :  { %578 = vmatprep.mubr.msk.f32.mxu0 %vm59_vm0, %v51_v12  ;;  %v286_v29 = vld [vmem:[%s800_s5] sm:$0xff]  ;;  %v508_v12 = vlaneseq }
   0xc   :  { %297 = vperm.xlu1 %630, %v289_v14   ;;  %592 = vmatprep.mubr.msk.f32.mxu1 %vm300_vm1, %v286_v29  ;;  %v384_v2 = vld [vmem:[%s801_s7] sm:$0xff] }
   0xd   :  { %292 = vperm.xlu0 %629, %v288_v13  }
   0xe   :  { %579 = vmatmul.mubr.msk.f32.vlgmr.msra.gmra.mrb[0].mxu0 %vm59_vm0, %v52_v15 }
   0xf   :  { %581 = vmatprep.mubr.msk.f32.mxu0 %vm59_vm0, %v53_v16  ;;  %v509_v16 = vshrl.u32 %v508_v12, 7 }
  0x10   :  { %484 = vperm.xlu1 %630, %v480_v18  }
  0x11   :  { %388 = vperm.xlu0 %629, %v385_v17   ;;  %v510_v20 = vsub.s32 0, %v509_v16 }
  0x12   :  { %582 = vmatmul.mubr.msk.f32.gmra.mrb[2].mxu0 %vm59_vm0, %v54_v19 }
  0x14   :  { %470 = vperm.xlu1 %630, %v467_v23  }
  0x15   :  { %489 = vperm.xlu0 %629, %v481_v22  }
  0x19   :  { %505 = vperm.xlu0 %629, %v502_v27  }
  0x83   :  { %v271_v31 = vpop.permute.xlu1 %270 }
  0x84   :  { %v261_v30 = vpop.permute.xlu0 %260 }
  0x87   :  { %v276_v33 = vpop.permute.xlu1 %275 }
  0x88   :  { %v266_v32 = vpop.permute.xlu0 %265 }
  0x8b   :  { %v298_v35 = vpop.permute.xlu1 %297 }
  0x8c   :  { %v293_v34 = vpop.permute.xlu0 %292 }
  0x8f   :  { %v485_v37 = vpop.permute.xlu1 %484 }
  0x90   :  { %v389_v36 = vpop.permute.xlu0 %388  ;;  %v492_v38 = vmul.f32 %v485_v37, %v465_v24 }
  0x93   :  { %v471_v9 = vpop.permute.xlu1 %470 }
  0x94   :  { %v490_v39 = vpop.permute.xlu0 %489 }
  0x95   :  { %v493_v40 = vmul.f32 %v490_v39, %v466_v28 }
  0x97   :  { %v494_v41 = vadd.f32 %v493_v40, %v492_v38 }
  0x98   :  { %v506_v22 = vpop.permute.xlu0 %505 }
  0x99   :  { %v495_v3 = vrot.slane %v494_v41, 4  ;;  %v511_v25 = vrot.slane %v506_v22, %v510_v20 }
  0x9b   :  { %v496_v5 = vadd.f32 %v495_v3, %v494_v41 }
  0x9d   :  { %v497_v10 = vrot.slane %v496_v5, 2 }
  0x9f   :  { %v498_v14 = vadd.f32 %v497_v10, %v496_v5 }
  0xa1   :  { %v499_v18 = vrot.slane %v498_v14, 1 }
  0xa3   :  { %v500_v23 = vadd.f32 %v499_v18, %v498_v14 }
  0xe1   :  { %v580_v42 = vpop.f32.mrb[0].mxu0 }
  0xe2   :  { %v279_v43 = vadd.f32 %v580_v42, %v266_v32  ;;  %v235_v44 = vpop.f32.mrb[1].mxu0 }
  0xe3   :  { %v278_v45 = vadd.f32 %v261_v30, %v235_v44 }
  0xe4   :  { %v283_v46 = vmax.f32 %v279_v43, 0.0 }
  0xe5   :  { %v282_v47 = vmax.f32 %v278_v45, 0.0  ;;  %v583_v48 = vpop.f32.mrb[2].mxu0 }
  0xe6   :  { %v281_v49 = vadd.f32 %v583_v48, %v276_v33  ;;  %v245_v50 = vpop.f32.mrb[3].mxu0 }
  0xe7   :  { %v280_v51 = vadd.f32 %v271_v31, %v245_v50  ;;  %v610_v52 = vpack.c.bf16 %v283_v46, %v282_v47 }
  0xe8   :  { %v285_v53 = vmax.f32 %v281_v49, 0.0 }
  0xe9   :  { %v284_v54 = vmax.f32 %v280_v51, 0.0  ;;  %611 = vmatprep.subr.bf16.mxu1 %v610_v52 }
  0xea   :  { %613 = vmatpush3.bf16.msra.mxu1 %v610_v52 }
  0xeb   :  { %v614_v55 = vpack.c.bf16 %v285_v53, %v284_v54 }
  0xed   :  { %615 = vmatprep.subr.bf16.mxu1 %v614_v55 }
  0xee   :  { %617 = vmatpush3.bf16.msra.mxu1 %v614_v55 }
  0xef   :  { %618 = vmatprep.subr.bf16.mxu1 %v636_v57 }
  0xf1   :  { %593 = vmatmul.mubr.msk.f32.vlgmr.msra.gmra.mrb[0].mxu1 %vm300_vm1, %v287_v56 }
  0xf2   :  { %599 = vmatprep.mubr.msk.f32.mxu1 %vm637_vm2, %v638_v58 }
 0x1c4   :  { %v594_v59 = vpop.f32.mrb[0].mxu1 }
 0x1c5   :  { %v379_v60 = vadd.f32 %v594_v59, %v298_v35  ;;  %v373_v61 = vpop.f32.mrb[1].mxu1 }
 0x1c6   :  { %v374_v62 = vadd.f32 %v373_v61, %v293_v34 }
 0x1c7   :  { %v383_v63 = vmax.f32 %v379_v60, 0.0 }
 0x1c8   :  { %v382_v0 = vmax.f32 %v374_v62, 0.0 }
 0x1ca   :  { %v619_v1 = vpack.c.bf16 %v383_v63, %v382_v0 }
 0x1cc   :  { %620 = vmatpush3.bf16.msra.mxu1 %v619_v1 }
 0x1cf   :  { %600 = vmatmul.mubr.msk.f32.vlgmr.msra.gmra.mrb[2].mxu1 %vm59_vm0, %v384_v2 }
 0x2a2   :  { %v460_v4 = vpop.f32.mrb[2].mxu1 }
 0x2a3   :  { %v461_v6 = vadd.f32 %v460_v4, %v389_v36  ;;  %v601_v7 = vpop.f32.mrb[3].mxu1 }
 0x2a5   :  { %v464_v8 = vmax.f32 %v461_v6, 0.0 }
 0x2a7   :  { %v473_v11 = vmul.f32 %v471_v9, %v464_v8 }
 0x2a9   :  { %v474_v13 = vrot.slane %v473_v11, 4 }
 0x2ab   :  { %v475_v15 = vadd.f32 %v474_v13, %v473_v11 }
 0x2ad   :  { %v476_v17 = vrot.slane %v475_v15, 2 }
 0x2af   :  { %v477_v19 = vadd.f32 %v476_v17, %v475_v15 }
 0x2b1   :  { %v478_v21 = vrot.slane %v477_v19, 1 }
 0x2b3   :  { %v479_v24 = vadd.f32 %v478_v21, %v477_v19 }
 0x2b5   :  { %v501_v26 = vadd.f32 %v500_v23, %v479_v24 }
 0x2b7   :  { %v512_v27 = vadd.f32 %v511_v25, %v501_v26 }
 0x2b9   :  { %v513_v28 = vsub.f32 0.0, %v512_v27 }
 0x2bb   :  { %v514_v29 = vmul.f32 1.442695, %v513_v28 }
 0x2bd   :  { %631 = vpow2.f32 %v514_v29 }
 0x2c7   :  { %v632_v30 = vpop.eup %631 }
 0x2c8   :  { %v516_v31 = vadd.f32 1.0, %v632_v30 }
 0x2ca   :  { %633 = vrcp.f32 %v516_v31 }
 0x2d4   :  { %v634_v32 = vpop.eup %633 }
 0x2d5   :  { %519 = vst [vmem:[%s802_s12] sm:$0x1] %v634_v32 }

</bundles_post_ra>
